<compile_context>
chip_gen: v6e
topology: v6e:2x2x1
jax: 0.10.0
libtpu: 0.0.40
codegen_flags: <defaults>
</compile_context>

<pallas_src>
import functools

import jax
import jax.numpy as jnp
from jax.experimental import pallas as pl
from jax.experimental.pallas import tpu as pltpu

_MASK_ROW_BYTES = 512  # (tm, 1) f32 mask column pads to 128 lanes * 4 B per row


def _channel_dropout_kernel(mask_ref, x_ref, o_ref):
    # mask_ref: (TM, 1)  pre-scaled keep mask in f32 (0 or 1/(1-p))
    # x_ref   : (TM, TL)
    # o_ref   : (TM, TL)
    o_ref[...] = (x_ref[...].astype(jnp.float32) * mask_ref[...]).astype(o_ref.dtype)


def _round_up(a, b):
    return -(-a // b) * b


def _hw_budgets(override_block_bytes=None):
    """Per-block byte budget + vmem_limit_bytes, chosen per TPU generation."""
    block_bytes, vmem_limit = 4 << 20, 32 << 20          # safe fallback
    try:
        vmem = int(pltpu.get_tpu_info().vmem_capacity_bytes)
        if vmem >= (100 << 20):                          # v5e / v6e: 128 MiB VMEM
            block_bytes, vmem_limit = 8 << 20, 64 << 20
        else:                                            # v7x: 64 MiB VMEM
            block_bytes, vmem_limit = 6 << 20, 42 << 20
    except Exception:
        pass
    if override_block_bytes is not None:
        block_bytes = int(override_block_bytes)
    return block_bytes, vmem_limit


def _choose_tiles(m, l, itemsize, target_block_bytes, sublane):
    """Pick (TM, TL) respecting the (sublane, 128) tiling rule and a byte budget.

    Budget accounts for the x block (tm*tl*itemsize) plus the padded mask
    column (tm * 512 B).  Partial edge blocks are fine (Pallas masks OOB).
    """
    min_tl = l if l < 128 else 128
    min_tm = m if m < sublane else sublane

    # Case 1: whole (M, L) slab fits -> single block.
    if m * (l * itemsize + _MASK_ROW_BYTES) <= target_block_bytes:
        return m, l

    # Case 2: all rows fit at minimal lane width -> tm = M, grow TL to budget.
    if m * (min_tl * itemsize + _MASK_ROW_BYTES) <= target_block_bytes:
        tl_fit = (target_block_bytes - m * _MASK_ROW_BYTES) // (m * itemsize)
        tl = min(l, max(min_tl, (tl_fit // 128) * 128))
        return m, tl

    # Case 3: all lanes fit at minimal rows -> tl = L, grow TM to budget.
    if min_tm * (l * itemsize + _MASK_ROW_BYTES) <= target_block_bytes:
        tm_fit = target_block_bytes // (l * itemsize + _MASK_ROW_BYTES)
        tm = min(m, max(min_tm, (tm_fit // sublane) * sublane))
        return tm, l

    # Case 4: neither full axis fits; maximize lane width at `sublane` rows.
    tl_fit = (target_block_bytes // sublane - _MASK_ROW_BYTES) // itemsize
    tl = min(l, max(128, (tl_fit // 128) * 128))
    tm_fit = target_block_bytes // (tl * itemsize + _MASK_ROW_BYTES)
    tm = min(m, max(min_tm, (tm_fit // sublane) * sublane))
    return tm, tl


def _ensure_parallel_steps(m, l, tm, tl, itemsize, sublane, min_bytes=4 << 20):
    """Keep >= 2 grid steps for non-tiny tensors so v7x's 2nd TC isn't idle."""
    if pl.cdiv(m, tm) * pl.cdiv(l, tl) >= 2:
        return tm, tl
    if m * l * itemsize < min_bytes:
        return tm, tl                      # tiny tensor: extra step not worth it
    if m >= 2 * sublane:
        tm_new = _round_up(pl.cdiv(m, 2), sublane)
        if tm_new < m:
            return tm_new, tl
    if l >= 256:
        tl_new = _round_up(pl.cdiv(l, 2), 128)
        if tl_new < l:
            return tm, tl_new
    return tm, tl


def _pallas_apply_channel_mask(x2d, scaled_mask2d, tm, tl, vmem_limit, donate_x):
    """x2d: (M, L); scaled_mask2d: (M, 1) f32.  Returns x2d * scaled_mask2d."""
    M, L = x2d.shape
    grid = (pl.cdiv(M, tm), pl.cdiv(L, tl))
    kwargs = {}
    if donate_x:
        kwargs["input_output_aliases"] = {1: 0}   # x2d (operand 1) -> output 0
    return pl.pallas_call(
        _channel_dropout_kernel,
        out_shape=jax.ShapeDtypeStruct((M, L), x2d.dtype),
        grid_spec=pltpu.PrefetchScalarGridSpec(
            num_scalar_prefetch=0,
            grid=grid,
            in_specs=[
                pl.BlockSpec((tm, 1), lambda i, j: (i, 0)),    # mask (row tile)
                pl.BlockSpec((tm, tl), lambda i, j: (i, j)),   # x
            ],
            out_specs=pl.BlockSpec((tm, tl), lambda i, j: (i, j)),
        ),
        compiler_params=pltpu.CompilerParams(
            dimension_semantics=("parallel", "parallel"),
            vmem_limit_bytes=vmem_limit,
        ),
        **kwargs,
    )(scaled_mask2d, x2d)


def fixed_rate_channel_dropout(x, key, *, p, at_least_one=False,
                               at_least_left_one=False, training=True,
                               target_block_bytes=None, donate_x=False):
    """JAX/Pallas port of FixedRateChannelDropout.forward for (B, C, L) inputs."""
    assert x.ndim == 3
    assert 0.0 <= p <= 1.0
    if not training:
        return x

    B, C, L = x.shape
    drop_num = int(round(p * C))
    if at_least_one:
        drop_num = max(drop_num, 1)
    if at_least_left_one:
        drop_num = min(drop_num, C - 1)

    # Statically an identity: nothing dropped and no rescale.
    if drop_num == 0 and p == 0.0:
        return x

    # --- glue: exact-k random channel selection per batch row
    # (matches torch.rand + argsort semantics: uniform random subset of
    # exactly drop_num channels per row).
    r = jax.random.uniform(key, (B, C))
    ranks = jnp.argsort(jnp.argsort(r, axis=1), axis=1)   # rank of each channel
    keep = ranks >= drop_num                              # first drop_num ranks dropped
    # NOTE: like the PyTorch module, the rescale uses 1/(1-p) even when the
    # at_least_* flags clamp drop_num (expectation not preserved), and
    # p == 1.0 yields 0*inf = NaN on dropped channels exactly as the
    # reference does.  Mask stays f32 so low-precision x keeps full scale
    # accuracy; the single downcast happens on the store inside the kernel.
    scale = jnp.float32(1.0) / jnp.float32(1.0 - p)
    scaled_mask = keep.astype(jnp.float32) * scale

    # --- hot path in Pallas: 2-D flattened broadcast multiply.
    x2d = x.reshape(B * C, L)
    mask2d = scaled_mask.reshape(B * C, 1)

    itemsize = x.dtype.itemsize
    sublane = max(8, 32 // max(1, itemsize))   # 8 f32, 16 bf16, 32 int8/fp8
    block_bytes, vmem_limit = _hw_budgets(target_block_bytes)
    tm, tl = _choose_tiles(B * C, L, itemsize, block_bytes, sublane)
    tm, tl = _ensure_parallel_steps(B * C, L, tm, tl, itemsize, sublane)

    out2d = _pallas_apply_channel_mask(x2d, mask2d, tm, tl, vmem_limit, donate_x)
    return out2d.reshape(B, C, L)


if __name__ == "__main__":
    # Small deterministic example consistent with the module's 3-D input.
    B, C, L = 2, 8, 256
    p = 0.5

    key = jax.random.PRNGKey(0)
    kx, kmask = jax.random.split(key)
    x = jax.random.normal(kx, (B, C, L), dtype=jnp.float32)

    fn = jax.jit(functools.partial(
        fixed_rate_channel_dropout, p=p, at_least_one=True,
        at_least_left_one=True, training=True))
    out = jax.block_until_ready(fn(x, kmask))

    # Reference check (same mask computed in plain JAX).
    drop_num = min(max(int(round(p * C)), 1), C - 1)
    r = jax.random.uniform(kmask, (B, C))
    ranks = jnp.argsort(jnp.argsort(r, axis=1), axis=1)
    keep = (ranks >= drop_num).astype(x.dtype)
    ref = x * keep[:, :, None] * (1.0 / (1.0 - p))

    assert out.shape == (B, C, L) and out.dtype == x.dtype
    assert jnp.allclose(out, ref, atol=1e-6, rtol=1e-6)
    # exactly drop_num channels zeroed per batch row
    zeroed = jnp.sum(jnp.all(out == 0.0, axis=-1), axis=-1)
    assert bool(jnp.all(zeroed == drop_num))

    print("KERNEL_OK")
</pallas_src>

<mosaic_0001>
module attributes {stable_mosaic.version = 11 : i64} {
  func.func @_channel_dropout_kernel(%arg0: i32, %arg1: i32, %arg2: memref<16x1xf32, #tpu.memory_space<vmem>>, %arg3: memref<16x256xf32, #tpu.memory_space<vmem>>, %arg4: memref<16x256xf32, #tpu.memory_space<vmem>>) attributes {dimension_semantics = [#tpu.dimension_semantics<parallel>, #tpu.dimension_semantics<parallel>], iteration_bounds = array<i64: 1, 1>, scalar_prefetch = 0 : i64, scratch_operands = 0 : i64, tpu.core_type = #tpu.core_type<tc>, window_params = [{transform_indices = @transform_0, window_bounds = array<i64: 16, 1>}, {transform_indices = @transform_1, window_bounds = array<i64: 16, 256>}, {transform_indices = @transform_2, window_bounds = array<i64: 16, 256>}]} {
    %c0 = arith.constant 0 : index
    %c0_0 = arith.constant 0 : index
    %0 = vector.load %arg3[%c0, %c0_0] : memref<16x256xf32, #tpu.memory_space<vmem>>, vector<16x256xf32>
    %c0_1 = arith.constant 0 : index
    %c0_2 = arith.constant 0 : index
    %1 = vector.load %arg2[%c0_1, %c0_2] : memref<16x1xf32, #tpu.memory_space<vmem>>, vector<16x1xf32>
    %2 = vector.broadcast %1 : vector<16x1xf32> to vector<16x256xf32>
    %3 = arith.mulf %0, %2 : vector<16x256xf32>
    %c0_3 = arith.constant 0 : index
    %c0_4 = arith.constant 0 : index
    %4 = vector.load %arg4[%c0_3, %c0_4] : memref<16x256xf32, #tpu.memory_space<vmem>>, vector<16x256xf32>
    tpu.vector_store %arg4[%c0_3, %c0_4], %3 {strides = array<i32>} : memref<16x256xf32, #tpu.memory_space<vmem>>, vector<16x256xf32>,
    return
  }
  func.func @transform_0(%arg0: i32, %arg1: i32) -> (i32, i32) {
    %c0_i32 = arith.constant 0 : i32
    %c0_i32_0 = arith.constant 0 : i32
    return %arg0, %c0_i32 : i32, i32
  }
  func.func @transform_1(%arg0: i32, %arg1: i32) -> (i32, i32) {
    %c0_i32 = arith.constant 0 : i32
    return %arg0, %arg1 : i32, i32
  }
  func.func @transform_2(%arg0: i32, %arg1: i32) -> (i32, i32) {
    %c0_i32 = arith.constant 0 : i32
    return %arg0, %arg1 : i32, i32
  }
}

</mosaic_0001>

<bundles_post_ra>
// kernel: fixed_rate_channel_dropout.1
= control target key start
LH: loop header
LB: loop body
LE: loop exit
PB: predicated region body
PF: predicated region fallthrough
CT: control target
= control target key end

     0   :  { %v79_v1 = vmov 0   ;;  %s119_s0 = inlined_call_operand.vmem [shape: f32[16,1], index: 0, kind: input, shape index: {}]   ;;  %s120_s1 = inlined_call_operand.vmem [shape: f32[16,256], index: 1, kind: input, shape index: {}]   ;;  %s121_s2 = inlined_call_operand.hbm [shape: f32[16,256], index: 2, kind: output, shape index: {}]  }
   0x1   :  { %v16_v0 = vld [vmem:[%s119_s0] sm:$0xff]  ;;  %56 = vset.pattern.permute.xlu0 %v79_v1 }
   0x2   :  { %20 = vperm.xlu0 %56, %v16_v0  }
   0x3   :  { %7 = vsyncpa [#allocation3], 0  ;;  %v17_v2 = vld [vmem:[%s119_s0 + $0x8] sm:$0xff]  ;;  %v12_v3 = vld [vmem:[%s120_s1] sm:$0xff]  ;;  %s80_s17 = smov [#allocation2]  }
   0x4   :  { %v13_v4 = vld [vmem:[%s120_s1 + $0x8] sm:$0xff]  ;;  %s41_s18 = sshll.u32 %s80_s17, 4  ;;  %v14_v8 = vld [vmem:[%s120_s1 + $0x10] sm:$0xff]  ;;  %v15_v9 = vld [vmem:[%s120_s1 + $0x18] sm:$0xff]  ;;  %s42_s18 = int_to_ptr.vmem [resolvable:$true] %s41_s18 }
   0x5   :  { %s57_s22 = scalar_lea.vmem %s42_s18, 512  ;;  %p62_p1 = scmp.lt.s32.totalorder %s42_s18, %s42_s18 }
   0x6   :  { %25 = vperm.xlu0 %56, %v17_v2   ;;  %p58_p0 = scmp.ne.s32.totalorder %s42_s18, %s57_s22  ;;  %p63_p2 = scmp.lt.s32.totalorder %s57_s22, %s57_s22 }
   0x8   :  { %p64_p3 = por %p63_p2, %p62_p1 }
   0xa   :  { %p65_p4 = pnand %p64_p3, %p58_p0 }
  0x7d   :  { %v21_v5 = vpop.permute.xlu0 %20 }
  0x7e   :  { %v28_v6 = vmul.f32 %v21_v5, %v12_v3  ;;  %v29_v7 = vmul.f32 %v21_v5, %v13_v4 }
  0x80   :  { %32 = vst [vmem:[#allocation2] sm:$0xff] %v28_v6  ;;  %33 = vst [vmem:[#allocation2 + $0x8] sm:$0xff] %v29_v7 }
  0x81   :  { %v26_v10 = vpop.permute.xlu0 %25 }
  0x82   :  { %v30_v11 = vmul.f32 %v26_v10, %v14_v8  ;;  %v31_v12 = vmul.f32 %v26_v10, %v15_v9 }
  0x84   :  { %34 = vst [vmem:[#allocation2 + $0x10] sm:$0xff] %v30_v11  ;;  %35 = vst [vmem:[#allocation2 + $0x18] sm:$0xff] %v31_v12 }
  0x85   :  { %68 = shalt.err (!%p65_p4)
}
  0x86   :  { %s81_s23 = smov 256   ;;  %s82_s24 = smov 16  }
  0x87   :  { %47 = dma.vmem_to_hbm [thread:$0]  %s42_s18, 512, %s121_s2, [#allocation3], %s81_s23, %s81_s23, %s82_s24  }
  0x88   :  { %77 = dma.done.wait [#allocation3], 512  }
  0x89   :  { %78 = vsyncadd [#allocation3], 4294966784 }
  0x8a   :  { %51 = vsyncpa [#allocation3], 1 }

</bundles_post_ra>
